<compile_context>
chip_gen: v7x
topology: tpu7x:2x2x1
jax: 0.10.0
libtpu: 0.0.40
codegen_flags: <defaults>
</compile_context>

<pallas_src>
import functools

import jax
import jax.numpy as jnp
from jax.experimental import pallas as pl
from jax.experimental.pallas import tpu as pltpu


E1 = 0.1
EPS = 1e-9

_SUB_N = 512          # columns per inner-loop step (bounds the vreg live set)
_MAX_TILE_N = 32768   # columns per grid step (amortizes ~0.35us/step overhead)

_MXU_OK = None        # lazily-evaluated feature probe result


def _round_up(x, k):
    return ((x + k - 1) // k) * k


def _iou_num_kernel(pred_ref, gt_ref, mask_ref, u_ref, num_ref, *, use_mxu):
    """Partial numerator sum(mask * (1 - iou)) for one (batch, column-tile).

    pred_ref, gt_ref : (m, tile_n) f32 lane-dense coefficient tiles
    mask_ref         : (1, tile_n) f32, exactly {0, 1}
    u_ref            : (L, m) f32 basis
    num_ref          : (8, 128) f32, per-tile scalar broadcast into a full vreg
                       (unmasked store; host reads element [0, 0])
    """
    L, m = u_ref.shape
    tile_n = pred_ref.shape[1]
    c = 2.0 * E1 * L                       # = sum_l (2 * e1)
    u = u_ref[...]                          # tiny (L, m), loaded once per step

    sub_n = min(_SUB_N, tile_n)
    n_full = tile_n // sub_n
    rem = tile_n - n_full * sub_n           # static; multiple of 128 (or 0)

    def partial_num(c0, width):
        # width is a static python int, multiple of 128.
        if not isinstance(c0, int):
            c0 = pl.multiple_of(c0, 128)
        cols = pl.ds(c0, width)
        delta = pred_ref[:, cols] - gt_ref[:, cols]            # (m, width)  VPU

        if use_mxu:
            # x-coordinate delta on the otherwise-idle MXU, f32 accumulation.
            x = jnp.dot(u, delta, preferred_element_type=jnp.float32)  # (L, width)
            s = jnp.sum(jnp.abs(x), axis=0, keepdims=True)     # (1, width)
        else:
            # VPU fallback: chunk the L axis by 8 sublanes so acc stays small.
            s = jnp.zeros((1, width), jnp.float32)
            for l0 in range(0, L, 8):
                lc = min(8, L - l0)
                acc = u[l0:l0 + lc, 0:1] * delta[0:1, :]
                for j in range(1, m):
                    acc = acc + u[l0:l0 + lc, j:j + 1] * delta[j:j + 1, :]
                s = s + jnp.sum(jnp.abs(acc), axis=0, keepdims=True)

        # d1 = c - s, d2 = c + s  (per-sample algebraic rewrite of min/max form)
        iou = (c - s) / (s + (c + EPS))                        # exact divide
        contrib = mask_ref[:, cols] * (1.0 - iou)
        return jnp.sum(contrib)                                # scalar f32

    num = jnp.zeros((), jnp.float32)
    if n_full == 1:
        num = num + partial_num(0, sub_n)
    else:
        def body(i, acc):
            return acc + partial_num(i * sub_n, sub_n)
        num = jax.lax.fori_loop(0, n_full, body, num, unroll=2)
    if rem:
        num = num + partial_num(n_full * sub_n, rem)

    num_ref[...] = jnp.full((8, 128), num, dtype=jnp.float32)


def _pallas_iou_num(pred_bmn, gt_bmn, mask_b1n, U, *, use_mxu):
    """pred/gt: (b, m, HW) f32; mask: (b, 1, HW) f32 {0,1}; U: (L, m) f32.

    Returns sum over all pixels of mask * (1 - iou)  (a scalar).
    """
    b, m, HW = pred_bmn.shape
    L = U.shape[0]

    HW_pad = _round_up(HW, 128)
    n_tiles = -(-HW_pad // _MAX_TILE_N)
    if b * n_tiles < 2:
        # Keep >= 2 grid steps so both TensorCores are used on v7x.
        n_tiles = min(2, HW_pad // 128)
    tile_n = _round_up(-(-HW_pad // n_tiles), 128)
    total = n_tiles * tile_n

    if total != HW:
        pad = total - HW
        # Padded columns carry mask=0 and delta=0, so they contribute nothing.
        pred_bmn = jnp.pad(pred_bmn, ((0, 0), (0, 0), (0, pad)))
        gt_bmn = jnp.pad(gt_bmn, ((0, 0), (0, 0), (0, pad)))
        mask_b1n = jnp.pad(mask_b1n, ((0, 0), (0, 0), (0, pad)))

    kernel = functools.partial(_iou_num_kernel, use_mxu=use_mxu)

    partials = pl.pallas_call(
        kernel,
        out_shape=jax.ShapeDtypeStruct((b, n_tiles, 8, 128), jnp.float32),
        grid_spec=pltpu.PrefetchScalarGridSpec(
            num_scalar_prefetch=0,
            grid=(b, n_tiles),
            in_specs=[
                pl.BlockSpec((None, m, tile_n), lambda bi, ti: (bi, 0, ti)),
                pl.BlockSpec((None, m, tile_n), lambda bi, ti: (bi, 0, ti)),
                pl.BlockSpec((None, 1, tile_n), lambda bi, ti: (bi, 0, ti)),
                pl.BlockSpec((L, m), lambda bi, ti: (0, 0)),
            ],
            out_specs=pl.BlockSpec((None, None, 8, 128),
                                   lambda bi, ti: (bi, ti, 0, 0)),
        ),
        compiler_params=pltpu.CompilerParams(
            dimension_semantics=("parallel", "parallel")),
    )(pred_bmn, gt_bmn, mask_b1n, U)

    return jnp.sum(partials[:, :, 0, 0])


def _mxu_contraction_ok(L, m):
    """Feature probe: does the tiny-K (L,m)@(m,width) f32 dot lower on this Mosaic?"""
    global _MXU_OK
    if _MXU_OK is None:
        try:
            p = jnp.zeros((1, m, 512), jnp.float32)
            msk = jnp.zeros((1, 1, 512), jnp.float32)
            u = jnp.zeros((L, m), jnp.float32)
            jax.block_until_ready(_pallas_iou_num(p, p, msk, u, use_mxu=True))
            _MXU_OK = True
        except Exception:
            _MXU_OK = False
    return _MXU_OK


def iou_loss_numerator(pred_bmn, gt_bmn, mask_b1n, U):
    use_mxu = _mxu_contraction_ok(int(U.shape[0]), int(U.shape[1]))
    return _pallas_iou_num(pred_bmn, gt_bmn, mask_b1n, U, use_mxu=use_mxu)


def loss_function_forward(coeff_map_nchw, coeff_label_bhwm, seg_label, visit, U):
    """Mirrors Loss_Function.forward. Returns dict with 'coeff_iou' and 'sum'."""
    b, m, h, w = coeff_map_nchw.shape
    HW = h * w

    # exclude_map = seg_label.unsqueeze(3) * visit.unsqueeze(3); torch selects == 1.0,
    # so build an exact {0,1} mask (robust to non-binary labels).
    exclude = ((seg_label * visit) == 1.0).astype(jnp.float32).reshape(b, 1, HW)

    # Prediction is NCHW: channel-first (b, m, HW) is a FREE reshape (no HBM pass).
    pred = coeff_map_nchw.reshape(b, m, HW).astype(jnp.float32)
    # TODO(synk): coeff_label arrives channel-last (b, h, w, m); this single
    # transpose is the one remaining HBM-level layout shuffle and disappears if
    # the label is stored channel-first upstream.
    gt = jnp.transpose(coeff_label_bhwm.reshape(b, HW, m), (0, 2, 1)).astype(jnp.float32)

    num = iou_loss_numerator(pred, gt, exclude, U.astype(jnp.float32))
    cnt = jnp.sum(exclude)           # denominator computed XLA-side (tiny pass)
    # torch.mean over boolean-selected elements == masked-sum / count.
    # NaN if no valid pixel, matching torch.mean over an empty selection.
    coeff_iou = num / cnt

    loss_sum = jnp.float32(0.0) + coeff_iou
    return {"coeff_iou": coeff_iou, "sum": loss_sum}


def _reference(coeff_map_nchw, coeff_label_bhwm, seg_label, visit, U):
    """Plain-JAX reference of the original torch math, for a sanity check."""
    hp = jax.lax.Precision.HIGHEST
    out = jnp.transpose(coeff_map_nchw, (0, 2, 3, 1))
    x_out = jnp.einsum("bhwm,lm->bhwl", out, U, precision=hp)
    x_gt = jnp.einsum("bhwm,lm->bhwl", coeff_label_bhwm, U, precision=hp)
    d1 = jnp.sum(jnp.minimum(x_out + E1, x_gt + E1) -
                 jnp.maximum(x_out - E1, x_gt - E1), axis=3)
    d2 = jnp.sum(jnp.maximum(x_out + E1, x_gt + E1) -
                 jnp.minimum(x_out - E1, x_gt - E1), axis=3)
    iou = d1 / (d2 + EPS)
    mask = (seg_label * visit) == 1.0
    return jnp.sum(jnp.where(mask, 1.0 - iou, 0.0)) / jnp.sum(mask.astype(jnp.float32))


if __name__ == "__main__":
    # cfg-like constants: top_m coefficients, L sampled y positions
    b, h, w = 2, 16, 16
    top_m = 4
    L = 32

    key = jax.random.PRNGKey(0)
    k1, k2, k3, k4, k5 = jax.random.split(key, 5)

    # Deterministic synthetic "U" basis (would come from a pickle in the repo).
    U = jax.random.normal(k1, (L, top_m), dtype=jnp.float32) * 0.1

    coeff_map = jax.random.normal(k2, (b, top_m, h, w), dtype=jnp.float32)    # out['coeff_map'], NCHW
    coeff_label = jax.random.normal(k3, (b, h, w, top_m), dtype=jnp.float32)  # gt['coeff_label'][sf]
    seg_label = jax.random.bernoulli(k4, 0.5, (b, h, w)).astype(jnp.float32)  # gt['seg_label'][sf]
    visit = jax.random.bernoulli(k5, 0.8, (b, h, w)).astype(jnp.float32)      # gt['visit'][sf]

    loss_dict = jax.jit(loss_function_forward)(coeff_map, coeff_label,
                                               seg_label, visit, U)
    jax.block_until_ready(loss_dict["sum"])

    ref = _reference(coeff_map, coeff_label, seg_label, visit, U)
    # Tolerance covers f32 MXU multipass and cross-tile summation-order differences.
    assert jnp.allclose(loss_dict["coeff_iou"], ref, rtol=1e-3, atol=1e-3), (
        loss_dict["coeff_iou"], ref)

    print("KERNEL_OK")
</pallas_src>

<mosaic_0001>
module attributes {stable_mosaic.version = 11 : i64} {
  func.func @_iou_num_kernel(%arg0: i32, %arg1: i32, %arg2: memref<1x4x256xf32, #tpu.memory_space<vmem>>, %arg3: memref<1x4x256xf32, #tpu.memory_space<vmem>>, %arg4: memref<1x1x256xf32, #tpu.memory_space<vmem>>, %arg5: memref<32x4xf32, #tpu.memory_space<vmem>>, %arg6: memref<1x1x8x128xf32, #tpu.memory_space<vmem>>) attributes {dimension_semantics = [#tpu.dimension_semantics<parallel>, #tpu.dimension_semantics<parallel>], iteration_bounds = array<i64: 2, 1>, scalar_prefetch = 0 : i64, scratch_operands = 0 : i64, tpu.core_type = #tpu.core_type<tc>, window_params = [{transform_indices = @transform_0, window_bounds = array<i64: 1, 4, 256>}, {transform_indices = @transform_1, window_bounds = array<i64: 1, 4, 256>}, {transform_indices = @transform_2, window_bounds = array<i64: 1, 1, 256>}, {pipeline_mode = #tpu.pipeline_mode<synchronous>, transform_indices = @transform_3, window_bounds = array<i64: 32, 4>}, {transform_indices = @transform_4, window_bounds = array<i64: 1, 1, 8, 128>}]} {
    %c0 = arith.constant 0 : index
    %c0_0 = arith.constant 0 : index
    %0 = vector.load %arg5[%c0, %c0_0] : memref<32x4xf32, #tpu.memory_space<vmem>>, vector<32x4xf32>
    %c0_1 = arith.constant 0 : index
    %c0_2 = arith.constant 0 : index
    %c0_3 = arith.constant 0 : index
    %1 = vector.load %arg2[%c0_1, %c0_2, %c0_3] : memref<1x4x256xf32, #tpu.memory_space<vmem>>, vector<1x4x256xf32>
    %2 = vector.shape_cast %1 : vector<1x4x256xf32> to vector<4x256xf32>
    %c0_4 = arith.constant 0 : index
    %c0_5 = arith.constant 0 : index
    %c0_6 = arith.constant 0 : index
    %3 = vector.load %arg3[%c0_4, %c0_5, %c0_6] : memref<1x4x256xf32, #tpu.memory_space<vmem>>, vector<1x4x256xf32>
    %4 = vector.shape_cast %3 : vector<1x4x256xf32> to vector<4x256xf32>
    %5 = arith.subf %2, %4 : vector<4x256xf32>
    %cst = arith.constant dense<0.000000e+00> : vector<32x256xf32>
    %6 = tpu.matmul %0, %5, %cst {dimension_numbers = #tpu.dot_dimension_numbers<[1], [0], [0], [1], [0, 0, 1, 1], [], []>} : vector<32x4xf32>, vector<4x256xf32>, vector<32x256xf32> -> vector<32x256xf32>
    %7 = math.absf %6 : vector<32x256xf32>
    %cst_7 = arith.constant dense<0.000000e+00> : vector<256xf32>
    %8 = vector.multi_reduction <add>, %7, %cst_7 [0] : vector<32x256xf32> to vector<256xf32>
    %9 = vector.shape_cast %8 : vector<256xf32> to vector<1x256xf32>
    %cst_8 = arith.constant 6.400000e+00 : f32
    %10 = vector.broadcast %cst_8 : f32 to vector<1x256xf32>
    %11 = arith.subf %10, %9 : vector<1x256xf32>
    %cst_9 = arith.constant 6.400000e+00 : f32
    %12 = vector.broadcast %cst_9 : f32 to vector<1x256xf32>
    %13 = arith.addf %9, %12 : vector<1x256xf32>
    %14 = arith.divf %11, %13 : vector<1x256xf32>
    %c0_10 = arith.constant 0 : index
    %c0_11 = arith.constant 0 : index
    %c0_12 = arith.constant 0 : index
    %15 = vector.load %arg4[%c0_10, %c0_11, %c0_12] : memref<1x1x256xf32, #tpu.memory_space<vmem>>, vector<1x1x256xf32>
    %16 = vector.shape_cast %15 : vector<1x1x256xf32> to vector<1x256xf32>
    %cst_13 = arith.constant 1.000000e+00 : f32
    %17 = vector.broadcast %cst_13 : f32 to vector<1x256xf32>
    %18 = arith.subf %17, %14 : vector<1x256xf32>
    %19 = arith.mulf %16, %18 : vector<1x256xf32>
    %20 = vector.shape_cast %19 : vector<1x256xf32> to vector<1x1x256xf32>
    %cst_14 = arith.constant dense<0.000000e+00> : vector<1xf32>
    %21 = vector.multi_reduction <add>, %20, %cst_14 [1, 2] : vector<1x1x256xf32> to vector<1xf32>
    %22 = vector.shape_cast %21 : vector<1xf32> to vector<1x1x1xf32>
    %23 = vector.extract %22[0, 0, 0] : f32 from vector<1x1x1xf32>
    %cst_15 = arith.constant 0.000000e+00 : f32
    %24 = arith.addf %cst_15, %23 : f32
    %25 = vector.broadcast %24 : f32 to vector<8x128xf32>
    %c0_16 = arith.constant 0 : index
    %c0_17 = arith.constant 0 : index
    %c0_18 = arith.constant 0 : index
    %c0_19 = arith.constant 0 : index
    %26 = vector.load %arg6[%c0_16, %c0_17, %c0_18, %c0_19] : memref<1x1x8x128xf32, #tpu.memory_space<vmem>>, vector<1x1x8x128xf32>
    %27 = vector.shape_cast %26 : vector<1x1x8x128xf32> to vector<8x128xf32>
    %28 = vector.shape_cast %25 : vector<8x128xf32> to vector<1x1x8x128xf32>
    tpu.vector_store %arg6[%c0_16, %c0_17, %c0_18, %c0_19], %28 {strides = array<i32>} : memref<1x1x8x128xf32, #tpu.memory_space<vmem>>, vector<1x1x8x128xf32>,
    return
  }
  func.func @transform_0(%arg0: i32, %arg1: i32) -> (i32, i32, i32) {
    %c0_i32 = arith.constant 0 : i32
    %c0_i32_0 = arith.constant 0 : i32
    return %arg0, %c0_i32, %arg1 : i32, i32, i32
  }
  func.func @transform_1(%arg0: i32, %arg1: i32) -> (i32, i32, i32) {
    %c0_i32 = arith.constant 0 : i32
    %c0_i32_0 = arith.constant 0 : i32
    return %arg0, %c0_i32, %arg1 : i32, i32, i32
  }
  func.func @transform_2(%arg0: i32, %arg1: i32) -> (i32, i32, i32) {
    %c0_i32 = arith.constant 0 : i32
    %c0_i32_0 = arith.constant 0 : i32
    return %arg0, %c0_i32, %arg1 : i32, i32, i32
  }
  func.func @transform_3(%arg0: i32, %arg1: i32) -> (i32, i32) {
    %c0_i32 = arith.constant 0 : i32
    %c0_i32_0 = arith.constant 0 : i32
    %c0_i32_1 = arith.constant 0 : i32
    return %c0_i32, %c0_i32_0 : i32, i32
  }
  func.func @transform_4(%arg0: i32, %arg1: i32) -> (i32, i32, i32, i32) {
    %c0_i32 = arith.constant 0 : i32
    %c0_i32_0 = arith.constant 0 : i32
    %c0_i32_1 = arith.constant 0 : i32
    return %arg0, %arg1, %c0_i32, %c0_i32_0 : i32, i32, i32, i32
  }
}

</mosaic_0001>

<bundles_post_ra>
// kernel: loss_function_forward.1
= control target key start
LH: loop header
LB: loop body
LE: loop exit
PB: predicated region body
PF: predicated region fallthrough
CT: control target
= control target key end

     0   :  { %s716_s15 = smov 0   ;;  %s718_s16 = smov 0   ;;  %s776_s0 = inlined_call_operand.vmem [shape: f32[2,4,256], index: 0, kind: input, shape index: {}]   ;;  %s777_s1 = inlined_call_operand.vmem [shape: f32[2,4,256], index: 1, kind: input, shape index: {}]   ;;  %s778_s2 = inlined_call_operand.vmem [shape: f32[2,1,256], index: 2, kind: input, shape index: {}]   ;;  %s779_s3 = inlined_call_operand.vmem [shape: f32[32,4], index: 3, kind: input, shape index: {}]   ;;  %s780_s4 = inlined_call_operand.vmem [shape: f32[2,1,8,128], index: 4, kind: output, shape index: {}]  }
   0x1   :  { %s720_s17 = smov 0  }
   0x2 LB: > { %s26_s18 = sadd.s32 1, %s683_s16  ;;  %p614_p0 = scmp.ge.s32.totalorder %s687_s17, 1  ;;  %s687_s17 = sphi %s720_s17, %s14_s17   ;;  %s683_s16 = sphi %s718_s16, %s782_s16   ;;  %s679_s15 = sphi %s716_s15, %s781_s15  }
   0x3   : > { %p28_p1 = scmp.ge.s32.totalorder %s26_s18, 2  ;;  %p216_p2 = scmp.lt.s32.totalorder %s687_s17, 3 }
   0x5   : > { %s784_s18 = smov (%p28_p1, %s26_s18), 0  ;;  %p217_p3 = pnand %p614_p0, %p216_p2 }
   0x6   : > { %p266_p4 = scmp.lt.s32.totalorder (!%p217_p3), %s679_s15, 1  ;;  %v689_v0 = vmov (!%p217_p3), 0.0   ;;  %vm323_vm0 = vcmask (!%p217_p3), 1043456   ;;  %v301_v5 = vld [vmem:[%s779_s3] sm:$0xff] (!%p217_p3)  ;;  %vm310_vm1 = vcmask (!%p217_p3), 31744   ;;  %v303_v6 = vld [vmem:[%s779_s3 + $0x10] sm:$0xff] (!%p217_p3)  ;;  %v460_v47 = vlaneseq (!%p217_p3) }
   0x7   : > { %220 = sbr.rel (%p217_p3) target bundleno = 498 (0x1f2), region = 36  ;;  %392 = vmatprep.mubr.f32.mxu0 (!%p217_p3), %v689_v0  ;;  %404 = vmatprep.mubr.f32.mxu1 (!%p217_p3), %v689_v0  ;;  %v302_v7 = vld [vmem:[%s779_s3 + $0x8] sm:$0xff] (!%p217_p3)  ;;  %v304_v8 = vld [vmem:[%s779_s3 + $0x18] sm:$0xff] (!%p217_p3)  ;;  %v690_v45 = vmov (!%p217_p3), 1966171168   ;;  %vm484_vm2 = vcmask (!%p217_p3), 1040384  }
   0x8   : > { %v458_v46 = vunpack.c.l.s4 (!%p217_p3), %v690_v45  ;;  %v461_v52 = vshrl.u32 (!%p217_p3), %v460_v47, 7 }
   0xa   : > { %v459_v51 = vunpack.c.0.s8 (!%p217_p3), %v458_v46  ;;  %v476_v63 = vsub.s32 (!%p217_p3), 0, %v461_v52 }
   0xc   : > { %v462_v58 = vsub.s32 (!%p217_p3), %v459_v51, %v461_v52 }
   0xe   : > { %s786_s15 = smov (!%p266_p4, %s679_s15), 1 }
   0xf   : > { %s737_s19 = sshll.u32 %s786_s15, 3  ;;  %s619_s8 = sshll.u32 %s786_s15, 1 }
  0x10   : > { %s273_s22 = scalar_lea.vmem %s776_s0, %s737_s19  ;;  %s283_s25 = scalar_lea.vmem %s777_s1, %s737_s19 }
  0x11   : > { %v305_v1 = vld [vmem:[%s273_s22] sm:$0xff]  ;;  %s292_s11 = scalar_lea.vmem %s778_s2, %s619_s8  ;;  %s300_s14 = scalar_lea.vmem %s780_s4, %s737_s19 }
  0x12   : > { %v306_v2 = vld [vmem:[%s283_s25] sm:$0xff] }
  0x13   : > { %v307_v3 = vsub.f32 %v305_v1, %v306_v2  ;;  %v451_v61 = vld [vmem:[%s292_s11] sm:$0x3] }
  0x15   : > { %v309_v4 = vcombine.high %v307_v3, %v307_v3 }
  0x17   : > { %621 = vmatprep.subr.msk.mxu0 %vm323_vm0, %v309_v4  ;;  %631 = vmatprep.subr.msk.mxu1 %vm323_vm0, %v309_v4 }
  0x18   : > { %622 = vmatpush1.msk.msra.mxu0 %vm323_vm0, %v307_v3  ;;  %632 = vmatpush1.msk.msra.mxu1 %vm323_vm0, %v307_v3 }
  0x19   : > { %623 = vmatmul.mubr.msk.f32.vlgmr.msra.gmra.mrb[0].mxu0 %vm310_vm1, %v301_v5  ;;  %625 = vmatmul.mubr.msk.f32.vlgmr.msra.gmra.mrb[0].mxu1 %vm310_vm1, %v303_v6 }
  0x1a   : > { %398 = vmatprep.mubr.f32.mxu0 %v689_v0  ;;  %410 = vmatprep.mubr.f32.mxu1 %v689_v0  ;;  %v480_v0 = vsub.s32 1, %v461_v52 }
  0x1d   : > { %624 = vmatmul.mubr.msk.f32.gmra.mrb[2].mxu0 %vm310_vm1, %v302_v7  ;;  %626 = vmatmul.mubr.msk.f32.gmra.mrb[2].mxu1 %vm310_vm1, %v304_v8 }
  0xec   : > { %v394_v9 = vpop.f32.mrb[0].mxu0  ;;  %v406_v10 = vpop.f32.mrb[0].mxu1 }
  0xed   : > { %v396_v11 = vpop.f32.mrb[1].mxu0  ;;  %v408_v12 = vpop.f32.mrb[1].mxu1  ;;  %v417_v15 = vand.u32 2147483647, %v394_v9  ;;  %v421_v21 = vand.u32 2147483647, %v406_v10 }
  0xee   : > { %v418_v19 = vand.u32 2147483647, %v396_v11  ;;  %v422_v24 = vand.u32 2147483647, %v408_v12 }
  0xf0   : > { %v400_v13 = vpop.f32.mrb[2].mxu0  ;;  %v412_v14 = vpop.f32.mrb[2].mxu1 }
  0xf1   : > { %v419_v16 = vand.u32 2147483647, %v400_v13  ;;  %v402_v17 = vpop.f32.mrb[3].mxu0  ;;  %v414_v18 = vpop.f32.mrb[3].mxu1  ;;  %v423_v23 = vand.u32 2147483647, %v412_v14 }
  0xf2   : > { %v420_v20 = vand.u32 2147483647, %v402_v17  ;;  %v424_v26 = vand.u32 2147483647, %v414_v18 }
  0xf3   : > { %v425_v22 = vadd.f32 %v419_v16, %v417_v15 }
  0xf4   : > { %v434_v25 = vadd.f32 %v420_v20, %v418_v19 }
  0xf5   : > { %v426_v27 = vadd.f32 %v425_v22, %v421_v21 }
  0xf6   : > { %v435_v28 = vadd.f32 %v434_v25, %v422_v24 }
  0xf7   : > { %v427_v29 = vadd.f32 %v426_v27, %v423_v23 }
  0xf8   : > { %v436_v30 = vadd.f32 %v435_v28, %v424_v26 }
  0xf9   : > { %v428_v31 = vrot.slane %v427_v29, 4 }
  0xfa   : > { %v437_v32 = vrot.slane %v436_v30, 4 }
  0xfb   : > { %v429_v33 = vadd.f32 %v428_v31, %v427_v29 }
  0xfc   : > { %v438_v34 = vadd.f32 %v437_v32, %v436_v30 }
  0xfd   : > { %v430_v35 = vrot.slane %v429_v33, 2 }
  0xfe   : > { %v439_v36 = vrot.slane %v438_v34, 2 }
  0xff   : > { %v431_v37 = vadd.f32 %v430_v35, %v429_v33 }
 0x100   : > { %v440_v38 = vadd.f32 %v439_v36, %v438_v34 }
 0x101   : > { %v432_v39 = vrot.slane %v431_v37, 1 }
 0x102   : > { %v441_v40 = vrot.slane %v440_v38, 1 }
 0x103   : > { %v433_v41 = vadd.f32 %v432_v39, %v431_v37 }
 0x104   : > { %v442_v42 = vadd.f32 %v441_v40, %v440_v38 }
 0x105   : > { %v445_v43 = vadd.f32 6.4, %v433_v41  ;;  %v443_v48 = vsub.f32 6.4, %v433_v41 }
 0x106   : > { %v446_v44 = vadd.f32 6.4, %v442_v42  ;;  %v444_v50 = vsub.f32 6.4, %v442_v42 }
 0x107   : > { %661 = vrcp.f32 %v445_v43 }
 0x108   : > { %663 = vrcp.f32 %v446_v44 }
 0x111   : > { %v662_v49 = vpop.eup %661 }
 0x112   : > { %v664_v53 = vpop.eup %663  ;;  %v448_v54 = vmul.f32 %v662_v49, %v443_v48 }
 0x113   : > { %v450_v55 = vmul.f32 %v664_v53, %v444_v50 }
 0x114   : > { %v452_v56 = vsub.f32 1.0, %v448_v54 }
 0x115   : > { %v453_v57 = vsub.f32 1.0, %v450_v55 }
 0x117   : > { %v456_v59 = vcombine.low %v452_v56, %v453_v57 }
 0x119   : > { %v463_v60 = vrot.slane %v456_v59, %v462_v58 }
 0x11b   : > { %v470_v62 = vrot.slane %v463_v60, %v462_v58 }
 0x11d   : > { %v472_v1 = vmul.f32 %v470_v62, %v451_v61 }
 0x11f   : > { %v477_v2 = vrot.slane %v472_v1, %v476_v63  ;;  %v481_v3 = vrot.slane %v472_v1, %v480_v0 }
 0x121   : > { %v485_v4 = vsel %vm484_vm2, %v477_v2, 0.0  ;;  %v486_v5 = vsel %vm484_vm2, %v481_v3, 0.0 }
 0x122   : > { %v487_v6 = vadd.f32 %v486_v5, %v485_v4 }
 0x124   : > { %488 = vadd.xlane.f32.xlu0 %v487_v6 }
 0x1b1   : > { %v489_v7 = vpop.xlane.xlu0 %488 }
 0x1b2   : > { %v490_v8 = vrot.slane %v489_v7, 4 }
 0x1b4   : > { %v491_v9 = vadd.f32 %v490_v8, %v489_v7 }
 0x1b6   : > { %v492_v10 = vrot.slane %v491_v9, 2 }
 0x1b8   : > { %v493_v11 = vadd.f32 %v492_v10, %v491_v9 }
 0x1ba   : > { %v494_v12 = vrot.slane %v493_v11, 1 }
 0x1bc   : > { %v495_v13 = vadd.f32 %v494_v12, %v493_v11 }
 0x1be   : > { %633 = vpush %v495_v13 }
 0x1ef   : > { %s634_s15 = spop %633 }
 0x1f0   : > { %v498_v14 = vstv %s634_s15 }
 0x1f1   : > { %499 = vst [vmem:[%s300_s14] sm:$0xff] %v498_v14 }
 0x1f2 PF: > { %s14_s17 = sadd.s32 1, %s687_s17   ;;  %s781_s15 = smov %s683_s16 }
 0x1f3   : > { %p11_p5 = scmp.ge.s32.totalorder %s14_s17, 4   ;;  %s782_s16 = smov %s784_s18 }
 0x1f5   :  { %13 = sbr.rel (!%p11_p5) target bundleno = 2 (0x2), region = 72 }

</bundles_post_ra>
